<compile_context>
chip_gen: v5e
topology: v5e:2x2
jax: 0.10.0
libtpu: 0.0.40
codegen_flags: <defaults>
</compile_context>

<pallas_src>
import math

import jax
import jax.numpy as jnp
from jax.experimental import pallas as pl
from jax.experimental.pallas import tpu as pltpu

NN_LAYER_1 = 200
NN_LAYER_2 = 100

# Lane-aligned padded per-head widths.
_H1P = 256            # 200 -> 256 (per-head layer-1 width)
_H2P = 128            # 100 -> 128 (per-head layer-2 width)
_H1C = 2 * _H1P       # 512: both heads, layer-1 activation width
_H2C = 2 * _H2P       # 256: both heads, layer-2 activation width
_OUT = 128            # lane width of packed layer-3 weights (q1 col 0, q2 col 1)
_OUT_ROWS = 8         # sublane rows of the transposed output slab


def _round_up(x, m):
    return (x + m - 1) // m * m


def _tpu_generation():
    """Best-effort chip-generation detection for tuning defaults."""
    try:
        kind = jax.devices()[0].device_kind.lower()
    except Exception:
        return "unknown"
    if "v5 lite" in kind or "v5e" in kind or "v5litepod" in kind:
        return "v5e"
    if "v7" in kind:
        return "v7x"
    if "v6" in kind:
        return "v6e"
    return "other"


def _layout(state_dim, act_dim):
    """Row offsets of each packed tensor inside the single bf16 weight slab."""
    K = state_dim + act_dim
    r_w1 = 0                          # (K, 512)    layer-1 weights, both heads
    r_b1 = _round_up(K, 8)            # (1, 512)    layer-1 bias
    r_w2 = r_b1 + 8                   # (512, 256)  block-diagonal layer-2
    r_b2 = r_w2 + _H1C                # (1, 256)
    r_w3 = r_b2 + 8                   # (256, 128)  packed layer-3 (q1 col 0, q2 col 1)
    r_b3 = r_w3 + _H2C                # (1, 128)
    n_rows = _round_up(r_b3 + 1, 8)
    return dict(r_w1=r_w1, r_b1=r_b1, r_w2=r_w2, r_b2=r_b2,
                r_w3=r_w3, r_b3=r_b3, n_rows=n_rows)


def _make_kernel(state_dim, act_dim, split_l2):
    """Build the kernel body.  split_l2=True uses per-head layer-2 dots (v5e)."""
    K = state_dim + act_dim
    L = _layout(state_dim, act_dim)
    r_b1, r_w2, r_b2, r_w3, r_b3 = L["r_b1"], L["r_w2"], L["r_b2"], L["r_w3"], L["r_b3"]

    def kernel(x_ref, w_ref, o_ref):
        # bf16 operands for every dot; f32 accumulation; f32 bias/ReLU.
        x = x_ref[...].astype(jnp.bfloat16)                      # (tb, K)

        # ---- layer 1: single K=(state+act) contraction, both heads fused ----
        w1 = w_ref[0:K, :]                                       # (K, 512) bf16
        b1 = w_ref[r_b1:r_b1 + 1, :]                             # (1, 512) bf16
        h1 = jnp.dot(x, w1, preferred_element_type=jnp.float32) + b1
        h1 = jnp.maximum(h1, 0.0)                                # (tb, 512) f32
        h1b = h1.astype(jnp.bfloat16)

        b2 = w_ref[r_b2:r_b2 + 1, 0:_H2C]                        # (1, 256) bf16
        b3 = w_ref[r_b3:r_b3 + 1, 0:_OUT]                        # (1, 128) bf16

        if split_l2:
            # v5e (128-wide MXU): two per-head (tb,256)@(256,128) dots -> half
            # the MXU tile passes of the fused block-diagonal form.
            w2a = w_ref[r_w2:r_w2 + _H1P, 0:_H2P]                # (256, 128)
            w2b = w_ref[r_w2 + _H1P:r_w2 + _H1C, _H2P:_H2C]      # (256, 128)
            h2a = jnp.maximum(
                jnp.dot(h1b[:, 0:_H1P], w2a,
                        preferred_element_type=jnp.float32) + b2[:, 0:_H2P], 0.0)
            h2b = jnp.maximum(
                jnp.dot(h1b[:, _H1P:_H1C], w2b,
                        preferred_element_type=jnp.float32) + b2[:, _H2P:_H2C], 0.0)
            w3a = w_ref[r_w3:r_w3 + _H2P, 0:_OUT]                # (128, 128)
            w3b = w_ref[r_w3 + _H2P:r_w3 + _H2C, 0:_OUT]         # (128, 128)
            q = (jnp.dot(h2a.astype(jnp.bfloat16), w3a,
                         preferred_element_type=jnp.float32)
                 + jnp.dot(h2b.astype(jnp.bfloat16), w3b,
                           preferred_element_type=jnp.float32)
                 + b3)                                           # (tb, 128) f32
        else:
            # v6e/v7x (256-wide MXU): fused block-diagonal layer 2.
            w2 = w_ref[r_w2:r_w2 + _H1C, 0:_H2C]                 # (512, 256)
            h2 = jnp.maximum(
                jnp.dot(h1b, w2, preferred_element_type=jnp.float32) + b2, 0.0)
            w3 = w_ref[r_w3:r_w3 + _H2C, 0:_OUT]                 # (256, 128)
            q = jnp.dot(h2.astype(jnp.bfloat16), w3,
                        preferred_element_type=jnp.float32) + b3  # (tb, 128) f32

        # ---- lane-dense transposed writeback: q1 -> row 0, q2 -> row 1 ----
        qt = jnp.transpose(q)                                    # (128, tb) XLU
        o_ref[...] = qt[0:_OUT_ROWS, :].astype(o_ref.dtype)      # (8, tb)

    return kernel, L["n_rows"]


def pack_params(params, state_dim, act_dim):
    """Pack the 12 per-layer tensors into one zero-padded bf16 (n_rows, 512) slab."""
    L = _layout(state_dim, act_dim)
    K = state_dim + act_dim
    slab = jnp.zeros((L["n_rows"], _H1C), jnp.float32)

    # layer 1: rows [0:K); head q1 -> cols [0:200), head q2 -> cols [256:456)
    slab = slab.at[0:K, 0:NN_LAYER_1].set(params["w1_q1"])
    slab = slab.at[0:K, _H1P:_H1P + NN_LAYER_1].set(params["w1_q2"])
    slab = slab.at[L["r_b1"], 0:NN_LAYER_1].set(params["b1_q1"].reshape(-1))
    slab = slab.at[L["r_b1"], _H1P:_H1P + NN_LAYER_1].set(params["b1_q2"].reshape(-1))

    # layer 2 block-diagonal (512, 256) stored in cols [0:256)
    r2 = L["r_w2"]
    slab = slab.at[r2:r2 + NN_LAYER_1, 0:NN_LAYER_2].set(params["w2_q1"])
    slab = slab.at[r2 + _H1P:r2 + _H1P + NN_LAYER_1,
                   _H2P:_H2P + NN_LAYER_2].set(params["w2_q2"])
    slab = slab.at[L["r_b2"], 0:NN_LAYER_2].set(params["b2_q1"].reshape(-1))
    slab = slab.at[L["r_b2"], _H2P:_H2P + NN_LAYER_2].set(params["b2_q2"].reshape(-1))

    # layer 3 (256, 128) stored in cols [0:128); q1 -> col 0, q2 -> col 1
    r3 = L["r_w3"]
    slab = slab.at[r3:r3 + NN_LAYER_2, 0].set(params["w3_q1"].reshape(-1))
    slab = slab.at[r3 + _H2P:r3 + _H2P + NN_LAYER_2, 1].set(params["w3_q2"].reshape(-1))
    slab = slab.at[L["r_b3"], 0].set(params["b3_q1"].reshape(()))
    slab = slab.at[L["r_b3"], 1].set(params["b3_q2"].reshape(()))
    return slab.astype(jnp.bfloat16)


def sac_critic_forward(state, action, packed_weights, *, batch_tile=None,
                       split_l2=None):
    """Pallas forward of SACCriticNet. Returns (q1, q2), each [B, 1] f32."""
    gen = _tpu_generation()
    B, state_dim = state.shape
    act_dim = action.shape[1]
    K = state_dim + act_dim

    if batch_tile is None:
        batch_tile = {"v6e": 2048, "v7x": 1024, "v5e": 1024}.get(gen, 1024)
    if split_l2 is None:
        split_l2 = gen == "v5e"      # 128-wide MXU: per-head layer-2 dots win

    kernel, n_rows = _make_kernel(state_dim, act_dim, split_l2)
    assert packed_weights.shape == (n_rows, _H1C), packed_weights.shape
    assert packed_weights.dtype == jnp.bfloat16

    # Concatenate once in the wrapper (as the PyTorch module does): layer 1
    # becomes a single K=(state+act) contraction and the input HBM read halves.
    x = jnp.concatenate([state, action], axis=1).astype(jnp.float32)

    # v7x has 2 TensorCores: use the parallel grid as soon as B supports >=2
    # tiles; single-TC chips keep the grid-less shortcut for small batches.
    use_grid = (B > batch_tile) or (gen == "v7x" and B >= 512)

    if not use_grid:
        vmem = pl.BlockSpec(memory_space=pltpu.MemorySpace.VMEM)
        out = pl.pallas_call(
            kernel,
            out_shape=jax.ShapeDtypeStruct((_OUT_ROWS, B), jnp.float32),
            in_specs=[vmem, vmem],
            out_specs=vmem,
        )(x, packed_weights)
    else:
        tile = _round_up(min(batch_tile, B), 128)
        if gen == "v7x":
            # Even step count so both TensorCores get equal work.
            steps = max(2, 2 * (-(-B // (2 * tile))))
            tile = _round_up(-(-B // steps), 128)
        vmem_limit = (48 << 20) if gen == "v7x" else (64 << 20)
        out = pl.pallas_call(
            kernel,
            out_shape=jax.ShapeDtypeStruct((_OUT_ROWS, B), jnp.float32),
            grid=(pl.cdiv(B, tile),),
            in_specs=[
                pl.BlockSpec((tile, K), lambda i: (i, 0)),
                # Constant index_map -> slab fetched once, stays VMEM-resident.
                pl.BlockSpec((n_rows, _H1C), lambda i: (0, 0)),
            ],
            out_specs=pl.BlockSpec((_OUT_ROWS, tile), lambda i: (0, i)),
            compiler_params=pltpu.CompilerParams(
                dimension_semantics=("parallel",),
                vmem_limit_bytes=vmem_limit),
        )(x, packed_weights)

    return out[0:1, :].T, out[1:2, :].T


def init_params(key, state_dim, act_dim):
    """Torch nn.Linear default init (U[-1/sqrt(fan_in), +1/sqrt(fan_in)]).

    Weights stored as (in_features, out_features) so y = x @ W + b."""
    dims = [
        ("w1_q1", "b1_q1", state_dim + act_dim, NN_LAYER_1),
        ("w2_q1", "b2_q1", NN_LAYER_1, NN_LAYER_2),
        ("w3_q1", "b3_q1", NN_LAYER_2, 1),
        ("w1_q2", "b1_q2", state_dim + act_dim, NN_LAYER_1),
        ("w2_q2", "b2_q2", NN_LAYER_1, NN_LAYER_2),
        ("w3_q2", "b3_q2", NN_LAYER_2, 1),
    ]
    params = {}
    keys = jax.random.split(key, 2 * len(dims))
    for i, (wname, bname, fan_in, fan_out) in enumerate(dims):
        bound = 1.0 / math.sqrt(fan_in)
        params[wname] = jax.random.uniform(
            keys[2 * i], (fan_in, fan_out), jnp.float32, -bound, bound)
        params[bname] = jax.random.uniform(
            keys[2 * i + 1], (1, fan_out), jnp.float32, -bound, bound)
    return params


def reference_forward(state, action, params):
    """Pure-JAX f32 reference (matches the PyTorch module)."""
    x = jnp.concatenate([state, action], axis=1)

    def head(suffix):
        h = jnp.maximum(x @ params[f"w1_{suffix}"] + params[f"b1_{suffix}"], 0.0)
        h = jnp.maximum(h @ params[f"w2_{suffix}"] + params[f"b2_{suffix}"], 0.0)
        return h @ params[f"w3_{suffix}"] + params[f"b3_{suffix}"]

    return head("q1"), head("q2")


if __name__ == "__main__":
    key = jax.random.PRNGKey(0)
    k_params, k_state, k_action, k_state2, k_action2 = jax.random.split(key, 5)

    batch = 8
    state_dim = 12
    act_dim = 4

    params = init_params(k_params, state_dim, act_dim)
    packed = pack_params(params, state_dim, act_dim)

    # bf16 matmul operands (f32 accumulation) -> loosened tolerances vs f32 ref.
    ATOL = 5e-2
    RTOL = 5e-2

    # --- small-batch (grid-less) path; exercise both layer-2 variants ---
    state = jax.random.normal(k_state, (batch, state_dim), jnp.float32)
    action = jax.random.normal(k_action, (batch, act_dim), jnp.float32)
    q1_ref, q2_ref = reference_forward(state, action, params)
    for force_split in (False, True):
        q1, q2 = sac_critic_forward(state, action, packed, split_l2=force_split)
        q1 = jax.block_until_ready(q1)
        q2 = jax.block_until_ready(q2)
        assert q1.shape == (batch, 1) and q2.shape == (batch, 1)
        assert jnp.allclose(q1, q1_ref, atol=ATOL, rtol=RTOL)
        assert jnp.allclose(q2, q2_ref, atol=ATOL, rtol=RTOL)

    # --- large-batch (parallel grid) path, B NOT divisible by the tile ---
    big = 1000
    state_b = jax.random.normal(k_state2, (big, state_dim), jnp.float32)
    action_b = jax.random.normal(k_action2, (big, act_dim), jnp.float32)
    q1b, q2b = sac_critic_forward(state_b, action_b, packed, batch_tile=512)
    q1b = jax.block_until_ready(q1b)
    q2b = jax.block_until_ready(q2b)
    q1b_ref, q2b_ref = reference_forward(state_b, action_b, params)
    assert q1b.shape == (big, 1) and q2b.shape == (big, 1)
    assert jnp.allclose(q1b, q1b_ref, atol=ATOL, rtol=RTOL)
    assert jnp.allclose(q2b, q2b_ref, atol=ATOL, rtol=RTOL)

    print("KERNEL_OK")
</pallas_src>

<mosaic_0001>
module attributes {stable_mosaic.version = 11 : i64} {
  func.func @kernel(%arg0: memref<8x16xf32, #tpu.memory_space<vmem>>, %arg1: memref<808x512xbf16, #tpu.memory_space<vmem>>, %arg2: memref<8x8xf32, #tpu.memory_space<vmem>>) attributes {dimension_semantics = [], scalar_prefetch = 0 : i64, scratch_operands = 0 : i64, tpu.core_type = #tpu.core_type<tc>} {
    %c0 = arith.constant 0 : index
    %c0_0 = arith.constant 0 : index
    %0 = vector.load %arg0[%c0, %c0_0] : memref<8x16xf32, #tpu.memory_space<vmem>>, vector<8x16xf32>
    %1 = arith.truncf %0 : vector<8x16xf32> to vector<8x16xbf16>
    %c0_1 = arith.constant 0 : index
    %c0_2 = arith.constant 0 : index
    %2 = vector.load %arg1[%c0_1, %c0_2] : memref<808x512xbf16, #tpu.memory_space<vmem>>, vector<16x512xbf16>
    %c16 = arith.constant 16 : index
    %c0_3 = arith.constant 0 : index
    %3 = vector.load %arg1[%c16, %c0_3] : memref<808x512xbf16, #tpu.memory_space<vmem>>, vector<1x512xbf16>
    %cst = arith.constant dense<0.000000e+00> : vector<8x512xf32>
    %4 = tpu.matmul %1, %2, %cst {dimension_numbers = #tpu.dot_dimension_numbers<[1], [0], [0], [1], [0, 0, 1, 1], [], []>} : vector<8x16xbf16>, vector<16x512xbf16>, vector<8x512xf32> -> vector<8x512xf32>
    %5 = arith.extf %3 : vector<1x512xbf16> to vector<1x512xf32>
    %6 = vector.broadcast %5 : vector<1x512xf32> to vector<8x512xf32>
    %7 = arith.addf %4, %6 : vector<8x512xf32>
    %cst_4 = arith.constant 0.000000e+00 : f32
    %8 = vector.broadcast %cst_4 : f32 to vector<8x512xf32>
    %9 = arith.maximumf %7, %8 : vector<8x512xf32>
    %10 = arith.truncf %9 : vector<8x512xf32> to vector<8x512xbf16>
    %c536 = arith.constant 536 : index
    %c0_5 = arith.constant 0 : index
    %11 = vector.load %arg1[%c536, %c0_5] : memref<808x512xbf16, #tpu.memory_space<vmem>>, vector<1x256xbf16>
    %c800 = arith.constant 800 : index
    %c0_6 = arith.constant 0 : index
    %12 = vector.load %arg1[%c800, %c0_6] : memref<808x512xbf16, #tpu.memory_space<vmem>>, vector<1x128xbf16>
    %c24 = arith.constant 24 : index
    %c0_7 = arith.constant 0 : index
    %13 = vector.load %arg1[%c24, %c0_7] : memref<808x512xbf16, #tpu.memory_space<vmem>>, vector<512x256xbf16>
    %cst_8 = arith.constant dense<0.000000e+00> : vector<8x256xf32>
    %14 = tpu.matmul %10, %13, %cst_8 {dimension_numbers = #tpu.dot_dimension_numbers<[1], [0], [0], [1], [0, 0, 1, 1], [], []>} : vector<8x512xbf16>, vector<512x256xbf16>, vector<8x256xf32> -> vector<8x256xf32>
    %15 = arith.extf %11 : vector<1x256xbf16> to vector<1x256xf32>
    %16 = vector.broadcast %15 : vector<1x256xf32> to vector<8x256xf32>
    %17 = arith.addf %14, %16 : vector<8x256xf32>
    %cst_9 = arith.constant 0.000000e+00 : f32
    %18 = vector.broadcast %cst_9 : f32 to vector<8x256xf32>
    %19 = arith.maximumf %17, %18 : vector<8x256xf32>
    %c544 = arith.constant 544 : index
    %c0_10 = arith.constant 0 : index
    %20 = vector.load %arg1[%c544, %c0_10] : memref<808x512xbf16, #tpu.memory_space<vmem>>, vector<256x128xbf16>
    %21 = arith.truncf %19 : vector<8x256xf32> to vector<8x256xbf16>
    %cst_11 = arith.constant dense<0.000000e+00> : vector<8x128xf32>
    %22 = tpu.matmul %21, %20, %cst_11 {dimension_numbers = #tpu.dot_dimension_numbers<[1], [0], [0], [1], [0, 0, 1, 1], [], []>} : vector<8x256xbf16>, vector<256x128xbf16>, vector<8x128xf32> -> vector<8x128xf32>
    %23 = arith.extf %12 : vector<1x128xbf16> to vector<1x128xf32>
    %24 = vector.broadcast %23 : vector<1x128xf32> to vector<8x128xf32>
    %25 = arith.addf %22, %24 : vector<8x128xf32>
    %26 = tpu.transpose %25, [1, 0] : vector<8x128xf32> -> vector<128x8xf32>
    %27 = vector.extract_strided_slice %26 {offsets = [0, 0], sizes = [8, 8], strides = [1, 1]} : vector<128x8xf32> to vector<8x8xf32>
    %c0_12 = arith.constant 0 : index
    %c0_13 = arith.constant 0 : index
    %28 = vector.load %arg2[%c0_12, %c0_13] : memref<8x8xf32, #tpu.memory_space<vmem>>, vector<8x8xf32>
    tpu.vector_store %arg2[%c0_12, %c0_13], %27 {strides = array<i32>} : memref<8x8xf32, #tpu.memory_space<vmem>>, vector<8x8xf32>,
    return
  }
}

</mosaic_0001>

<bundles_post_ra>
// kernel: tpu_custom_call.1
= control target key start
LH: loop header
LB: loop body
LE: loop exit
PB: predicated region body
PF: predicated region fallthrough
CT: control target
= control target key end

     0   :  { %7 = vsyncpa [#allocation3], 0  ;;  %s1396_s0 = inlined_call_operand.hbm [shape: f32[8,16], index: 0, kind: input, shape index: {}]   ;;  %s1397_s1 = inlined_call_operand.hbm [shape: bf16[808,512], index: 1, kind: input, shape index: {}]   ;;  %s1398_s2 = inlined_call_operand.hbm [shape: f32[8,8], index: 2, kind: output, shape index: {}]  }
   0x1   :  { %8 = vsyncpa [#allocation6], 0 }
   0x2   :  { %9 = vsyncpa [#allocation4], 0  ;;  %s15_s11 = sshll.u32 %s1396_s0, 4  ;;  %s1357_s12 = smov [#allocation2]   ;;  %s16_s11 = int_to_ptr.hbm [resolvable:$true] %s15_s11 }
   0x3   :  { %s17_s13 = sshll.u32 %s1357_s12, 4  ;;  %s25_s16 = sshll.u32 %s1397_s1, 4  ;;  %s18_s13 = int_to_ptr.vmem [resolvable:$true] %s17_s13  ;;  %s26_s16 = int_to_ptr.hbm [resolvable:$true] %s25_s16 }
   0x4   :  { %20 = dma.hbm_to_vmem [thread:$0]  %s16_s11, 128, %s18_s13, [#allocation3]  }
   0x5   :  { %s1358_s17 = smov [#allocation5]   ;;  %s1359_s19 = smov 256  }
   0x6   :  { %s27_s18 = sshll.u32 %s1358_s17, 4  ;;  %s1360_s20 = smov 16   ;;  %s28_s18 = int_to_ptr.vmem [resolvable:$true] %s27_s18 }
   0x7   :  { %33 = dma.hbm_to_vmem [thread:$0]  %s26_s16, 25856, %s28_s18, [#allocation6], %s1359_s19, %s1359_s19, %s1360_s20  }
   0x8   :  { %1351 = dma.done.wait [#allocation3], 128  }
   0x9   :  { %1352 = vsyncadd [#allocation3], 4294967168 }
   0xa   :  { %1353 = dma.done.wait [#allocation6], 25856  }
   0xb   :  { %1354 = vsyncadd [#allocation6], 4294941440  ;;  %v851_v0 = vld [vmem:[#allocation5] sm:$0xf]  ;;  %v1191_v1 = vld [vmem:[#allocation5 + $0xc] sm:$0xf0] }
   0xc   :  { %v1189_v2 = vld [vmem:[#allocation5 + $0x4] sm:$0xf]  ;;  %v852_v3 = vor.u32 %v1191_v1, %v851_v0  ;;  %v853_v4 = vld [vmem:[#allocation5 + $0x10] sm:$0xf0]  ;;  %v43_v5 = vld [vmem:[#allocation2] sm:$0xff]  ;;  %vm79_vm0 = vcmask 130048  }
   0xd   :  { %v859_v6 = vld [vmem:[#allocation5 + $0x8] sm:$0xf]  ;;  %v856_v7 = vor.u32 %v1189_v2, %v853_v4  ;;  %v1383_v8 = vpack.c.bf16 %v43_v5, %v43_v5  ;;  %v1192_v9 = vld [vmem:[#allocation5 + $0x14] sm:$0xf0]  ;;  %v1190_v10 = vld [vmem:[#allocation5 + $0xc] sm:$0xf] }
   0xe   :  { %v861_v11 = vld [vmem:[#allocation5 + $0x18] sm:$0xf0]  ;;  %90 = vmatpush.bf16.msra.mxu2 %v852_v3  ;;  %v860_v12 = vor.u32 %v1192_v9, %v859_v6  ;;  %v927_v14 = vld [vmem:[#allocation5 + $0x110] sm:$0xf]  ;;  %v1208_v15 = vld [vmem:[#allocation5 + $0x11c] sm:$0xf0] }
   0xf   :  { %v864_v13 = vor.u32 %v1190_v10, %v861_v11  ;;  %v991_v16 = vld [vmem:[#allocation5 + $0x210] sm:$0xf]  ;;  %103 = vmatpush.bf16.msra.mxu3 %v856_v7  ;;  %v928_v17 = vor.u32 %v1208_v15, %v927_v14  ;;  %v1224_v18 = vld [vmem:[#allocation5 + $0x21c] sm:$0xf0]  ;;  %s1361_s0 = smov [#allocation7]   ;;  %s838_s23 = sshll.u32 %s1398_s2, 4  ;;  %s839_s23 = int_to_ptr.hbm [resolvable:$true] %s838_s23 }
  0x10   :  { %v919_v19 = vld [vmem:[#allocation5 + $0xf0] sm:$0xf]  ;;  %v1206_v20 = vld [vmem:[#allocation5 + $0xfc] sm:$0xf0]  ;;  %v992_v21 = vor.u32 %v1224_v18, %v991_v16  ;;  %s836_s1 = sshll.u32 %s1361_s0, 4  ;;  %vm829_vm1 = vcmask 64512   ;;  %s837_s1 = int_to_ptr.vmem [resolvable:$true] %s836_s1 }
  0x11   :  { %v983_v22 = vld [vmem:[#allocation5 + $0x1f0] sm:$0xf]  ;;  %v1222_v23 = vld [vmem:[#allocation5 + $0x1fc] sm:$0xf0]  ;;  %865 = vmatmul.msk.bf16.vlgmr.msra.gmra.mxu2 %vm79_vm0, %v1383_v8  ;;  %533 = vmatpush.bf16.msra.mxu0 %v928_v17  ;;  %v920_v24 = vor.u32 %v1206_v20, %v919_v19 }
  0x12   :  { %116 = vmatpush.bf16.msrb.mxu2 %v860_v12  ;;  %866 = vmatmul.msk.bf16.vlgmr.msra.gmra.mxu3 %vm79_vm0, %v1383_v8  ;;  %v984_v25 = vor.u32 %v1222_v23, %v983_v22  ;;  %v911_v26 = vld [vmem:[#allocation5 + $0xd0] sm:$0xf]  ;;  %v1204_v27 = vld [vmem:[#allocation5 + $0xdc] sm:$0xf0] }
  0x13   :  { %129 = vmatpush.bf16.msrb.mxu3 %v864_v13  ;;  %546 = vmatpush.bf16.msra.mxu1 %v992_v21  ;;  %v975_v28 = vld [vmem:[#allocation5 + $0x1d0] sm:$0xf]  ;;  %v1220_v29 = vld [vmem:[#allocation5 + $0x1dc] sm:$0xf0]  ;;  %v912_v31 = vor.u32 %v1204_v27, %v911_v26 }
  0x14   :  { %v1055_v30 = vld [vmem:[#allocation5 + $0x310] sm:$0xf]  ;;  %v1240_v32 = vld [vmem:[#allocation5 + $0x31c] sm:$0xf0]  ;;  %v976_v35 = vor.u32 %v1220_v29, %v975_v28 }
  0x15   :  { %534 = vmatpush.bf16.msra.mxu0 %v920_v24  ;;  %v1119_v33 = vld [vmem:[#allocation5 + $0x410] sm:$0xf]  ;;  %v1256_v34 = vld [vmem:[#allocation5 + $0x41c] sm:$0xf0]  ;;  %v1056_v39 = vor.u32 %v1240_v32, %v1055_v30  ;;  %v1207_v30 = vld [vmem:[#allocation5 + $0x114] sm:$0xf] }
  0x16   :  { %v903_v36 = vld [vmem:[#allocation5 + $0xb0] sm:$0xf]  ;;  %v1202_v37 = vld [vmem:[#allocation5 + $0xbc] sm:$0xf0]  ;;  %v1120_v40 = vor.u32 %v1256_v34, %v1119_v33  ;;  %v1223_v32 = vld [vmem:[#allocation5 + $0x214] sm:$0xf] }
  0x17   :  { %547 = vmatpush.bf16.msra.mxu1 %v984_v25  ;;  %v967_v38 = vld [vmem:[#allocation5 + $0x1b0] sm:$0xf]  ;;  %v1218_v41 = vld [vmem:[#allocation5 + $0x1bc] sm:$0xf0]  ;;  %559 = vmatpush.bf16.msra.mxu2 %v1056_v39  ;;  %v904_v47 = vor.u32 %v1202_v37, %v903_v36  ;;  %v993_v33 = vld [vmem:[#allocation5 + $0x220] sm:$0xf0] }
  0x18   :  { %v1047_v42 = vld [vmem:[#allocation5 + $0x2f0] sm:$0xf]  ;;  %v1238_v43 = vld [vmem:[#allocation5 + $0x2fc] sm:$0xf0]  ;;  %572 = vmatpush.bf16.msra.mxu3 %v1120_v40  ;;  %v968_v51 = vor.u32 %v1218_v41, %v967_v38  ;;  %v996_v39 = vor.u32 %v1223_v32, %v993_v33  ;;  %v1205_v40 = vld [vmem:[#allocation5 + $0xf4] sm:$0xf] }
  0x19   :  { %v1048_v44 = vor.u32 %v1238_v43, %v1047_v42  ;;  %v1111_v45 = vld [vmem:[#allocation5 + $0x3f0] sm:$0xf]  ;;  %v1254_v46 = vld [vmem:[#allocation5 + $0x3fc] sm:$0xf0]  ;;  %535 = vmatpush.bf16.msra.mxu0 %v912_v31  ;;  %v929_v31 = vld [vmem:[#allocation5 + $0x120] sm:$0xf0] }
  0x1a   :  { %v895_v48 = vld [vmem:[#allocation5 + $0x90] sm:$0xf]  ;;  %v1200_v49 = vld [vmem:[#allocation5 + $0x9c] sm:$0xf0]  ;;  %v1112_v50 = vor.u32 %v1254_v46, %v1111_v45  ;;  %v932_v38 = vor.u32 %v1207_v30, %v929_v31  ;;  %v921_v41 = vld [vmem:[#allocation5 + $0x100] sm:$0xf0] }
  0x1b   :  { %548 = vmatpush.bf16.msra.mxu1 %v976_v35  ;;  %v1039_v52 = vld [vmem:[#allocation5 + $0x2d0] sm:$0xf]  ;;  %v1236_v53 = vld [vmem:[#allocation5 + $0x2dc] sm:$0xf0]  ;;  %560 = vmatpush.bf16.msra.mxu2 %v1048_v44  ;;  %v896_v61 = vor.u32 %v1200_v49, %v895_v48  ;;  %v1221_v42 = vld [vmem:[#allocation5 + $0x1f4] sm:$0xf]  ;;  %v924_v44 = vor.u32 %v1205_v40, %v921_v41 }
  0x1c   :  { %v1103_v54 = vld [vmem:[#allocation5 + $0x3d0] sm:$0xf]  ;;  %v1216_v56 = vld [vmem:[#allocation5 + $0x19c] sm:$0xf0]  ;;  %573 = vmatpush.bf16.msra.mxu3 %v1112_v50  ;;  %v1040_v58 = vor.u32 %v1236_v53, %v1039_v52  ;;  %v985_v43 = vld [vmem:[#allocation5 + $0x200] sm:$0xf0] }
  0x1d   :  { %v959_v55 = vld [vmem:[#allocation5 + $0x190] sm:$0xf]  ;;  %v1252_v57 = vld [vmem:[#allocation5 + $0x3dc] sm:$0xf0]  ;;  %536 = vmatpush.bf16.msra.mxu0 %v904_v47  ;;  %v988_v45 = vor.u32 %v1221_v42, %v985_v43  ;;  %v1203_v46 = vld [vmem:[#allocation5 + $0xd4] sm:$0xf] }
  0x1e   :  { %v1104_v59 = vor.u32 %v1252_v57, %v1103_v54  ;;  %v1031_v60 = vld [vmem:[#allocation5 + $0x2b0] sm:$0xf]  ;;  %v1234_v62 = vld [vmem:[#allocation5 + $0x2bc] sm:$0xf0]  ;;  %v960_v1 = vor.u32 %v1216_v56, %v959_v55  ;;  %v913_v47 = vld [vmem:[#allocation5 + $0xe0] sm:$0xf0] }
  0x1f   :  { %v1095_v63 = vld [vmem:[#allocation5 + $0x3b0] sm:$0xf]  ;;  %v1250_v0 = vld [vmem:[#allocation5 + $0x3bc] sm:$0xf0]  ;;  %549 = vmatpush.bf16.msra.mxu1 %v968_v51  ;;  %561 = vmatpush.bf16.msra.mxu2 %v1040_v58  ;;  %v1032_v6 = vor.u32 %v1234_v62, %v1031_v60  ;;  %v1219_v48 = vld [vmem:[#allocation5 + $0x1d4] sm:$0xf]  ;;  %v916_v49 = vor.u32 %v1203_v46, %v913_v47 }
  0x20   :  { %v887_v2 = vld [vmem:[#allocation5 + $0x70] sm:$0xf]  ;;  %v1198_v3 = vld [vmem:[#allocation5 + $0x7c] sm:$0xf0]  ;;  %574 = vmatpush.bf16.msra.mxu3 %v1104_v59  ;;  %v1096_v7 = vor.u32 %v1250_v0, %v1095_v63  ;;  %v977_v50 = vld [vmem:[#allocation5 + $0x1e0] sm:$0xf0] }
  0x21   :  { %v951_v4 = vld [vmem:[#allocation5 + $0x170] sm:$0xf]  ;;  %v1214_v5 = vld [vmem:[#allocation5 + $0x17c] sm:$0xf0]  ;;  %867 = vmatmul.msk.bf16.vlgmr.msrb.gmra.mxu2 %vm79_vm0, %v1383_v8  ;;  %537 = vmatpush.bf16.msra.mxu0 %v896_v61  ;;  %v888_v10 = vor.u32 %v1198_v3, %v887_v2  ;;  %v980_v51 = vor.u32 %v1219_v48, %v977_v50  ;;  %v1201_v57 = vld [vmem:[#allocation5 + $0xb4] sm:$0xf] }
  0x22   :  { %v1023_v9 = vld [vmem:[#allocation5 + $0x290] sm:$0xf]  ;;  %v1232_v11 = vld [vmem:[#allocation5 + $0x29c] sm:$0xf0]  ;;  %868 = vmatmul.msk.bf16.vlgmr.msrb.gmra.mxu3 %vm79_vm0, %v1383_v8  ;;  %v952_v14 = vor.u32 %v1214_v5, %v951_v4  ;;  %v905_v58 = vld [vmem:[#allocation5 + $0xc0] sm:$0xf0] }
  0x23   :  { %v1087_v12 = vld [vmem:[#allocation5 + $0x390] sm:$0xf]  ;;  %v1248_v13 = vld [vmem:[#allocation5 + $0x39c] sm:$0xf0]  ;;  %550 = vmatpush.bf16.msra.mxu1 %v960_v1  ;;  %562 = vmatpush.bf16.msra.mxu2 %v1032_v6  ;;  %v1024_v19 = vor.u32 %v1232_v11, %v1023_v9  ;;  %v908_v60 = vor.u32 %v1201_v57, %v905_v58  ;;  %v1217_v61 = vld [vmem:[#allocation5 + $0x1b4] sm:$0xf] }
  0x24   :  { %v879_v15 = vld [vmem:[#allocation5 + $0x50] sm:$0xf]  ;;  %v1196_v16 = vld [vmem:[#allocation5 + $0x5c] sm:$0xf0]  ;;  %575 = vmatpush.bf16.msra.mxu3 %v1096_v7  ;;  %v1088_v20 = vor.u32 %v1248_v13, %v1087_v12  ;;  %v969_v62 = vld [vmem:[#allocation5 + $0x1c0] sm:$0xf0] }
  0x25   :  { %v943_v17 = vld [vmem:[#allocation5 + $0x150] sm:$0xf]  ;;  %v1212_v18 = vld [vmem:[#allocation5 + $0x15c] sm:$0xf0]  ;;  %538 = vmatpush.bf16.msra.mxu0 %v888_v10  ;;  %v880_v22 = vor.u32 %v1196_v16, %v879_v15  ;;  %v972_v63 = vor.u32 %v1217_v61, %v969_v62  ;;  %v1199_v5 = vld [vmem:[#allocation5 + $0x94] sm:$0xf] }
  0x26   :  { %v1015_v21 = vld [vmem:[#allocation5 + $0x270] sm:$0xf]  ;;  %v1230_v23 = vld [vmem:[#allocation5 + $0x27c] sm:$0xf0]  ;;  %v944_v26 = vor.u32 %v1212_v18, %v943_v17  ;;  %v897_v6 = vld [vmem:[#allocation5 + $0xa0] sm:$0xf0] }
  0x27   :  { %v1079_v24 = vld [vmem:[#allocation5 + $0x370] sm:$0xf]  ;;  %v1246_v25 = vld [vmem:[#allocation5 + $0x37c] sm:$0xf0]  ;;  %551 = vmatpush.bf16.msra.mxu1 %v952_v14  ;;  %563 = vmatpush.bf16.msra.mxu2 %v1024_v19  ;;  %v1016_v34 = vor.u32 %v1230_v23, %v1015_v21  ;;  %v900_v9 = vor.u32 %v1199_v5, %v897_v6  ;;  %v1215_v10 = vld [vmem:[#allocation5 + $0x194] sm:$0xf] }
  0x28   :  { %v871_v27 = vld [vmem:[#allocation5 + $0x30] sm:$0xf]  ;;  %v1194_v8 = vld [vmem:[#allocation5 + $0x3c] sm:$0xf0]  ;;  %576 = vmatpush.bf16.msra.mxu3 %v1088_v20  ;;  %v1080_v35 = vor.u32 %v1246_v25, %v1079_v24  ;;  %v961_v11 = vld [vmem:[#allocation5 + $0x1a0] sm:$0xf0] }
  0x29   :  { %v935_v28 = vld [vmem:[#allocation5 + $0x130] sm:$0xf]  ;;  %v1210_v29 = vld [vmem:[#allocation5 + $0x13c] sm:$0xf0]  ;;  %539 = vmatpush.bf16.msra.mxu0 %v880_v22  ;;  %v872_v36 = vor.u32 %v1194_v8, %v871_v27  ;;  %v1239_v12 = vld [vmem:[#allocation5 + $0x314] sm:$0xf]  ;;  %v964_v13 = vor.u32 %v1215_v10, %v961_v11 }
  0x2a   :  { %v936_v37 = vor.u32 %v1210_v29, %v935_v28  ;;  %v1007_v52 = vld [vmem:[#allocation5 + $0x250] sm:$0xf]  ;;  %v1228_v53 = vld [vmem:[#allocation5 + $0x25c] sm:$0xf0]  ;;  %v1057_v14 = vld [vmem:[#allocation5 + $0x320] sm:$0xf0] }
  0x2b   :  { %552 = vmatpush.bf16.msra.mxu1 %v944_v26  ;;  %564 = vmatpush.bf16.msra.mxu2 %v1016_v34  ;;  %v1071_v54 = vld [vmem:[#allocation5 + $0x350] sm:$0xf]  ;;  %v1008_v55 = vor.u32 %v1228_v53, %v1007_v52  ;;  %v1244_v56 = vld [vmem:[#allocation5 + $0x35c] sm:$0xf0]  ;;  %v1255_v15 = vld [vmem:[#allocation5 + $0x414] sm:$0xf]  ;;  %v1060_v17 = vor.u32 %v1239_v12, %v1057_v14 }
  0x2c   :  { %577 = vmatpush.bf16.msra.mxu3 %v1080_v35  ;;  %v1072_v59 = vor.u32 %v1244_v56, %v1071_v54  ;;  %v999_v0 = vld [vmem:[#allocation5 + $0x230] sm:$0xf]  ;;  %v1226_v1 = vld [vmem:[#allocation5 + $0x23c] sm:$0xf0]  ;;  %v1121_v16 = vld [vmem:[#allocation5 + $0x420] sm:$0xf0] }
  0x2d   :  { %540 = vmatpush.bf16.msra.mxu0 %v872_v36  ;;  %v1063_v2 = vld [vmem:[#allocation5 + $0x330] sm:$0xf]  ;;  %v1000_v3 = vor.u32 %v1226_v1, %v999_v0  ;;  %v1242_v4 = vld [vmem:[#allocation5 + $0x33c] sm:$0xf0]  ;;  %v1124_v18 = vor.u32 %v1255_v15, %v1121_v16  ;;  %v1197_v19 = vld [vmem:[#allocation5 + $0x74] sm:$0xf] }
  0x2e   :  { %v1064_v7 = vor.u32 %v1242_v4, %v1063_v2  ;;  %v889_v20 = vld [vmem:[#allocation5 + $0x80] sm:$0xf0]  ;;  %v1213_v21 = vld [vmem:[#allocation5 + $0x174] sm:$0xf] }
  0x2f   :  { %553 = vmatpush.bf16.msra.mxu1 %v936_v37  ;;  %565 = vmatpush.bf16.msra.mxu2 %v1008_v55  ;;  %v892_v22 = vor.u32 %v1197_v19, %v889_v20  ;;  %v953_v23 = vld [vmem:[#allocation5 + $0x180] sm:$0xf0]  ;;  %v1237_v24 = vld [vmem:[#allocation5 + $0x2f4] sm:$0xf] }
  0x30   :  { %578 = vmatpush.bf16.msra.mxu3 %v1072_v59  ;;  %v1049_v25 = vld [vmem:[#allocation5 + $0x300] sm:$0xf0]  ;;  %v956_v26 = vor.u32 %v1213_v21, %v953_v23  ;;  %v1253_v8 = vld [vmem:[#allocation5 + $0x3f4] sm:$0xf] }
  0x31   :  { %585 = vmatpush.bf16.msrb.mxu0 %v932_v38  ;;  %v1052_v27 = vor.u32 %v1237_v24, %v1049_v25  ;;  %v1113_v28 = vld [vmem:[#allocation5 + $0x400] sm:$0xf0]  ;;  %v1195_v30 = vld [vmem:[#allocation5 + $0x54] sm:$0xf] }
  0x32   :  { %v1116_v29 = vor.u32 %v1253_v8, %v1113_v28  ;;  %v881_v31 = vld [vmem:[#allocation5 + $0x60] sm:$0xf0]  ;;  %v1211_v33 = vld [vmem:[#allocation5 + $0x154] sm:$0xf]  ;;  %v50_v8 = vld [vmem:[#allocation5 + $0x28] sm:$0x11] }
  0x33   :  { %598 = vmatpush.bf16.msrb.mxu1 %v996_v39  ;;  %566 = vmatpush.bf16.msra.mxu2 %v1000_v3  ;;  %v884_v32 = vor.u32 %v1195_v30, %v881_v31  ;;  %v945_v34 = vld [vmem:[#allocation5 + $0x160] sm:$0xf0]  ;;  %v1235_v35 = vld [vmem:[#allocation5 + $0x2d4] sm:$0xf]  ;;  %v53_v30 = vunpack.c.l.bf16 %v50_v8  ;;  %v54_v31 = vunpack.c.h.bf16 %v50_v8 }
  0x34   :  { %579 = vmatpush.bf16.msra.mxu3 %v1064_v7  ;;  %v948_v36 = vor.u32 %v1211_v33, %v945_v34  ;;  %v1041_v37 = vld [vmem:[#allocation5 + $0x2e0] sm:$0xf0]  ;;  %v1251_v38 = vld [vmem:[#allocation5 + $0x3d4] sm:$0xf] }
  0x35   :  { %586 = vmatpush.bf16.msrb.mxu0 %v924_v44  ;;  %v1044_v39 = vor.u32 %v1235_v35, %v1041_v37  ;;  %v1105_v40 = vld [vmem:[#allocation5 + $0x3e0] sm:$0xf0]  ;;  %v1193_v42 = vld [vmem:[#allocation5 + $0x34] sm:$0xf]  ;;  %v58_v33 = vperm.slane %v54_v31, 0 }
  0x36   :  { %v1108_v41 = vor.u32 %v1251_v38, %v1105_v40  ;;  %v873_v43 = vld [vmem:[#allocation5 + $0x40] sm:$0xf0]  ;;  %v1209_v44 = vld [vmem:[#allocation5 + $0x134] sm:$0xf]  ;;  %v1159_v31 = vld [vmem:[#allocation5 + $0x540] sm:$0xf] }
  0x37   :  { %599 = vmatpush.bf16.msrb.mxu1 %v988_v45  ;;  %611 = vmatpush.bf16.msrb.mxu2 %v1060_v17  ;;  %v876_v45 = vor.u32 %v1193_v42, %v873_v43  ;;  %v937_v46 = vld [vmem:[#allocation5 + $0x140] sm:$0xf0]  ;;  %v1233_v47 = vld [vmem:[#allocation5 + $0x2b4] sm:$0xf] }
  0x38   :  { %624 = vmatpush.bf16.msrb.mxu3 %v1124_v18  ;;  %v1033_v48 = vld [vmem:[#allocation5 + $0x2c0] sm:$0xf0]  ;;  %v1231_v55 = vld [vmem:[#allocation5 + $0x294] sm:$0xf] }
  0x39   :  { %587 = vmatpush.bf16.msrb.mxu0 %v916_v49  ;;  %v940_v49 = vor.u32 %v1209_v44, %v937_v46  ;;  %v1036_v50 = vor.u32 %v1233_v47, %v1033_v48  ;;  %v1097_v52 = vld [vmem:[#allocation5 + $0x3c0] sm:$0xf0]  ;;  %v1247_v57 = vld [vmem:[#allocation5 + $0x394] sm:$0xf]  ;;  %v1155_v44 = vld [vmem:[#allocation5 + $0x520] sm:$0xf] }
  0x3a   :  { %v49_v53 = vld [vmem:[#allocation5 + $0x20] sm:$0x11]  ;;  %v1229_v62 = vld [vmem:[#allocation5 + $0x274] sm:$0xf]  ;;  %v1263_v48 = vld [vmem:[#allocation5 + $0x50c] sm:$0xf0] }
  0x3b   :  { %600 = vmatpush.bf16.msrb.mxu1 %v980_v51  ;;  %612 = vmatpush.bf16.msrb.mxu2 %v1052_v27  ;;  %v1249_v51 = vld [vmem:[#allocation5 + $0x3b4] sm:$0xf]  ;;  %v1025_v56 = vld [vmem:[#allocation5 + $0x2a0] sm:$0xf0]  ;;  %v51_v61 = vunpack.c.l.bf16 %v49_v53  ;;  %v52_v1 = vunpack.c.h.bf16 %v49_v53  ;;  %v1151_v47 = vld [vmem:[#allocation5 + $0x500] sm:$0xf] }
  0x3c   :  { %625 = vmatpush.bf16.msrb.mxu3 %v1116_v29  ;;  %v1100_v54 = vor.u32 %v1249_v51, %v1097_v52  ;;  %v1028_v58 = vor.u32 %v1231_v55, %v1025_v56  ;;  %v1089_v59 = vld [vmem:[#allocation5 + $0x3a0] sm:$0xf0]  ;;  %v1245_v0 = vld [vmem:[#allocation5 + $0x374] sm:$0xf]  ;;  %v1262_v51 = vld [vmem:[#allocation5 + $0x4ec] sm:$0xf0] }
  0x3d   :  { %588 = vmatpush.bf16.msrb.mxu0 %v908_v60  ;;  %v1092_v60 = vor.u32 %v1247_v57, %v1089_v59  ;;  %v1081_v2 = vld [vmem:[#allocation5 + $0x380] sm:$0xf0]  ;;  %v1227_v5 = vld [vmem:[#allocation5 + $0x254] sm:$0xf]  ;;  %v55_v7 = vperm.slane %v51_v61, 0  ;;  %v56_v11 = vperm.slane %v52_v1, 0 }
  0x3e   :  { %v1084_v4 = vor.u32 %v1245_v0, %v1081_v2  ;;  %v1009_v6 = vld [vmem:[#allocation5 + $0x260] sm:$0xf0]  ;;  %v1225_v15 = vld [vmem:[#allocation5 + $0x234] sm:$0xf]  ;;  %v1143_v53 = vld [vmem:[#allocation5 + $0x4c0] sm:$0xf] }
  0x3f   :  { %601 = vmatpush.bf16.msrb.mxu1 %v972_v63  ;;  %613 = vmatpush.bf16.msrb.mxu2 %v1044_v39  ;;  %v1017_v63 = vld [vmem:[#allocation5 + $0x280] sm:$0xf0]  ;;  %v1012_v12 = vor.u32 %v1227_v5, %v1009_v6  ;;  %v1241_v19 = vld [vmem:[#allocation5 + $0x334] sm:$0xf]  ;;  %v1139_v56 = vld [vmem:[#allocation5 + $0x4a0] sm:$0xf] }
  0x40   :  { %626 = vmatpush.bf16.msrb.mxu3 %v1108_v41  ;;  %v1020_v3 = vor.u32 %v1229_v62, %v1017_v63  ;;  %v1073_v10 = vld [vmem:[#allocation5 + $0x360] sm:$0xf0]  ;;  %v1260_v57 = vld [vmem:[#allocation5 + $0x4ac] sm:$0xf0]  ;;  %v1135_v62 = vld [vmem:[#allocation5 + $0x480] sm:$0xf] }
  0x41   :  { %589 = vmatpush.bf16.msrb.mxu0 %v900_v9  ;;  %v1243_v9 = vld [vmem:[#allocation5 + $0x354] sm:$0xf]  ;;  %v1001_v16 = vld [vmem:[#allocation5 + $0x240] sm:$0xf0]  ;;  %v1140_v59 = vor.u32 %v1260_v57, %v1139_v56  ;;  %v1259_v63 = vld [vmem:[#allocation5 + $0x48c] sm:$0xf0] }
  0x42   :  { %v1076_v14 = vor.u32 %v1243_v9, %v1073_v10  ;;  %v1065_v20 = vld [vmem:[#allocation5 + $0x340] sm:$0xf0]  ;;  %v1004_v23 = vor.u32 %v1225_v15, %v1001_v16  ;;  %v1183_v0 = vld [vmem:[#allocation5 + $0x600] sm:$0xf]  ;;  %v1136_v1 = vor.u32 %v1259_v63, %v1135_v62  ;;  %v1271_v2 = vld [vmem:[#allocation5 + $0x60c] sm:$0xf0] }
  0x43   :  { %602 = vmatpush.bf16.msrb.mxu1 %v964_v13  ;;  %614 = vmatpush.bf16.msrb.mxu2 %v1036_v50  ;;  %v1068_v25 = vor.u32 %v1241_v19, %v1065_v20  ;;  %v1147_v50 = vld [vmem:[#allocation5 + $0x4e0] sm:$0xf]  ;;  %v1258_v5 = vld [vmem:[#allocation5 + $0x46c] sm:$0xf0] }
  0x44   :  { %627 = vmatpush.bf16.msrb.mxu3 %v1100_v54  ;;  %v1148_v52 = vor.u32 %v1262_v51, %v1147_v50  ;;  %v1261_v54 = vld [vmem:[#allocation5 + $0x4cc] sm:$0xf0]  ;;  %v1179_v6 = vld [vmem:[#allocation5 + $0x5e0] sm:$0xf] }
  0x45   :  { %590 = vmatpush.bf16.msrb.mxu0 %v892_v22  ;;  %v1144_v55 = vor.u32 %v1261_v54, %v1143_v53  ;;  %v1270_v9 = vld [vmem:[#allocation5 + $0x5ec] sm:$0xf0]  ;;  %v1167_v20 = vld [vmem:[#allocation5 + $0x580] sm:$0xf] }
  0x46   :  { %v1180_v10 = vor.u32 %v1270_v9, %v1179_v6  ;;  %v1269_v15 = vld [vmem:[#allocation5 + $0x5cc] sm:$0xf0]  ;;  %v144_v62 = vld [vmem:[#allocation5 + $0x640] sm:$0x1] }
  0x47   :  { %603 = vmatpush.bf16.msrb.mxu1 %v956_v26  ;;  %615 = vmatpush.bf16.msrb.mxu2 %v1028_v58  ;;  %v1187_v58 = vld [vmem:[#allocation5 + $0x620] sm:$0xf]  ;;  %v673_v63 = vunpack.c.l.bf16 %v144_v62 }
  0x48   :  { %628 = vmatpush.bf16.msrb.mxu3 %v1092_v60  ;;  %v1272_v60 = vld [vmem:[#allocation5 + $0x62c] sm:$0xf0] }
  0x49   :  { %591 = vmatpush.bf16.msrb.mxu0 %v884_v32  ;;  %v57_v32 = vperm.slane %v53_v30, 0  ;;  %v1188_v61 = vor.u32 %v1272_v60, %v1187_v58 }
  0x4b   :  { %604 = vmatpush.bf16.msrb.mxu1 %v948_v36  ;;  %616 = vmatpush.bf16.msrb.mxu2 %v1020_v3  ;;  %v1184_v3 = vor.u32 %v1271_v2, %v1183_v0 }
  0x4c   :  { %629 = vmatpush.bf16.msrb.mxu3 %v1084_v4  ;;  %v1131_v4 = vld [vmem:[#allocation5 + $0x460] sm:$0xf] }
  0x4d   :  { %592 = vmatpush.bf16.msrb.mxu0 %v876_v45  ;;  %v1264_v45 = vld [vmem:[#allocation5 + $0x52c] sm:$0xf0] }
  0x4e   :  { %v1156_v46 = vor.u32 %v1264_v45, %v1155_v44 }
  0x4f   :  { %605 = vmatpush.bf16.msrb.mxu1 %v940_v49  ;;  %617 = vmatpush.bf16.msrb.mxu2 %v1012_v12  ;;  %v1152_v49 = vor.u32 %v1263_v48, %v1151_v47  ;;  %v1257_v12 = vld [vmem:[#allocation5 + $0x44c] sm:$0xf0] }
  0x50   :  { %630 = vmatpush.bf16.msrb.mxu3 %v1076_v14 }
  0x53   :  { %618 = vmatpush.bf16.msrb.mxu2 %v1004_v23 }
  0x54   :  { %631 = vmatpush.bf16.msrb.mxu3 %v1068_v25  ;;  %v143_v25 = vld [vmem:[#allocation5 + $0x430] sm:$0x11] }
  0x94   :  { %v92_v13 = vpop.f32.mrf.mxu2 }
  0x95   :  { %v93_v17 = vadd.f32 %v92_v13, %v55_v7  ;;  %v105_v18 = vpop.f32.mrf.mxu3  ;;  %v1132_v7 = vor.u32 %v1258_v5, %v1131_v4  ;;  %v1175_v13 = vld [vmem:[#allocation5 + $0x5c0] sm:$0xf] }
  0x96   :  { %v106_v21 = vadd.f32 %v105_v18, %v56_v11  ;;  %v1127_v11 = vld [vmem:[#allocation5 + $0x440] sm:$0xf]  ;;  %v1176_v16 = vor.u32 %v1269_v15, %v1175_v13  ;;  %v1268_v18 = vld [vmem:[#allocation5 + $0x5ac] sm:$0xf0] }
  0x97   :  { %v135_v22 = vmax.f32 %v93_v17, 0.0  ;;  %v1128_v14 = vor.u32 %v1257_v12, %v1127_v11  ;;  %v1171_v17 = vld [vmem:[#allocation5 + $0x5a0] sm:$0xf] }
  0x98   :  { %v136_v24 = vmax.f32 %v106_v21, 0.0  ;;  %v1172_v19 = vor.u32 %v1268_v18, %v1171_v17  ;;  %v1267_v21 = vld [vmem:[#allocation5 + $0x58c] sm:$0xf0] }
  0x99   :  { %v139_v26 = vpack.c.bf16 %v135_v22, %v135_v22 }
  0x9a   :  { %v140_v27 = vpack.c.bf16 %v136_v24, %v136_v24  ;;  %v1168_v24 = vor.u32 %v1267_v21, %v1167_v20 }
  0x9b   :  { %541 = vmatmul.bf16.vlgmr.msra.gmra.mxu0 %v139_v26 }
  0x9c   :  { %554 = vmatmul.bf16.vlgmr.msra.gmra.mxu1 %v140_v27  ;;  %v94_v28 = vpop.f32.mrf.mxu2  ;;  %771 = vmatpush.bf16.msra.mxu0 %v1156_v46 }
  0x9d   :  { %v107_v29 = vpop.f32.mrf.mxu3  ;;  %784 = vmatpush.bf16.msra.mxu1 %v1188_v61 }
  0x9e   :  { %v209_v29 = vunpack.c.l.bf16 %v143_v25 }
  0xa0   :  { %772 = vmatpush.bf16.msra.mxu0 %v1152_v49 }
  0xa1   :  { %785 = vmatpush.bf16.msra.mxu1 %v1184_v3 }
  0xa4   :  { %v118_v34 = vpop.f32.mrf.mxu2  ;;  %773 = vmatpush.bf16.msra.mxu0 %v1148_v52 }
  0xa5   :  { %v119_v35 = vadd.f32 %v118_v34, %v57_v32  ;;  %v131_v36 = vpop.f32.mrf.mxu3  ;;  %786 = vmatpush.bf16.msra.mxu1 %v1180_v10  ;;  %v1265_v32 = vld [vmem:[#allocation5 + $0x54c] sm:$0xf0]  ;;  %v211_v34 = vperm.slane %v209_v29, 0 }
  0xa6   :  { %v132_v37 = vadd.f32 %v131_v36, %v58_v33  ;;  %v1160_v33 = vor.u32 %v1265_v32, %v1159_v31 }
  0xa7   :  { %v137_v38 = vmax.f32 %v119_v35, 0.0 }
  0xa8   :  { %v138_v39 = vmax.f32 %v132_v37, 0.0  ;;  %774 = vmatpush.bf16.msra.mxu0 %v1144_v55 }
  0xa9   :  { %v141_v40 = vpack.c.bf16 %v137_v38, %v137_v38  ;;  %787 = vmatpush.bf16.msra.mxu1 %v1176_v16 }
  0xaa   :  { %v142_v41 = vpack.c.bf16 %v138_v39, %v138_v39 }
  0xab   :  { %567 = vmatmul.bf16.vlgmr.msra.gmra.mxu2 %v141_v40  ;;  %593 = vmatmul.bf16.vlgmr.msrb.gmra.mxu0 %v139_v26  ;;  %v1163_v26 = vld [vmem:[#allocation5 + $0x560] sm:$0xf] }
  0xac   :  { %580 = vmatmul.bf16.vlgmr.msra.gmra.mxu3 %v142_v41  ;;  %606 = vmatmul.bf16.vlgmr.msrb.gmra.mxu1 %v140_v27  ;;  %v120_v42 = vpop.f32.mrf.mxu2  ;;  %v1266_v27 = vld [vmem:[#allocation5 + $0x56c] sm:$0xf0] }
  0xad   :  { %v133_v43 = vpop.f32.mrf.mxu3  ;;  %775 = vmatpush.bf16.msra.mxu0 %v1140_v59  ;;  %788 = vmatpush.bf16.msra.mxu1 %v1172_v19  ;;  %v1164_v8 = vor.u32 %v1266_v27, %v1163_v26 }
  0xae   :  { %v210_v43 = vunpack.c.h.bf16 %v143_v25 }
  0xb0   :  { %v212_v47 = vperm.slane %v210_v43, 0 }
  0xb1   :  { %776 = vmatpush.bf16.msra.mxu0 %v1136_v1  ;;  %789 = vmatpush.bf16.msra.mxu1 %v1168_v24  ;;  %v674_v1 = vperm.slane %v673_v63, 0 }
  0xb5   :  { %777 = vmatpush.bf16.msra.mxu0 %v1132_v7  ;;  %790 = vmatpush.bf16.msra.mxu1 %v1164_v8 }
  0xb9   :  { %778 = vmatpush.bf16.msra.mxu0 %v1128_v14  ;;  %791 = vmatpush.bf16.msra.mxu1 %v1160_v33 }
  0xbb   :  { %619 = vmatmul.bf16.vlgmr.msrb.gmra.mxu2 %v141_v40 }
  0xbc   :  { %632 = vmatmul.bf16.vlgmr.msrb.gmra.mxu3 %v142_v41 }
 0x118   :  { %v542_v22 = vpop.f32.mrf.mxu0 }
 0x119   :  { %v555_v23 = vpop.f32.mrf.mxu1  ;;  %v543_v36 = vadd.f32 %v542_v22, %v211_v34 }
 0x11b   :  { %v556_v38 = vadd.f32 %v555_v23, %v543_v36 }
 0x120   :  { %v544_v28 = vpop.f32.mrf.mxu0 }
 0x121   :  { %v557_v30 = vpop.f32.mrf.mxu1 }
 0x128   :  { %v594_v35 = vpop.f32.mrf.mxu0 }
 0x129   :  { %v607_v37 = vpop.f32.mrf.mxu1  ;;  %v595_v51 = vadd.f32 %v594_v35, %v212_v47 }
 0x12b   :  { %v608_v52 = vadd.f32 %v607_v37, %v595_v51 }
 0x12e   :  { %v568_v39 = vpop.f32.mrf.mxu2 }
 0x12f   :  { %v569_v40 = vadd.f32 %v568_v39, %v556_v38  ;;  %v581_v41 = vpop.f32.mrf.mxu3 }
 0x130   :  { %v596_v42 = vpop.f32.mrf.mxu0 }
 0x131   :  { %v582_v44 = vadd.f32 %v581_v41, %v569_v40  ;;  %v609_v45 = vpop.f32.mrf.mxu1 }
 0x133   :  { %v637_v46 = vmax.f32 %v582_v44, 0.0 }
 0x135   :  { %v671_v48 = vpack.c.bf16 %v637_v46, %v637_v46 }
 0x136   :  { %v570_v49 = vpop.f32.mrf.mxu2 }
 0x137   :  { %v583_v50 = vpop.f32.mrf.mxu3  ;;  %779 = vmatmul.bf16.vlgmr.msra.gmra.mxu0 %v671_v48 }
 0x13e   :  { %v620_v53 = vpop.f32.mrf.mxu2 }
 0x13f   :  { %v621_v54 = vadd.f32 %v620_v53, %v608_v52  ;;  %v633_v55 = vpop.f32.mrf.mxu3 }
 0x141   :  { %v634_v56 = vadd.f32 %v633_v55, %v621_v54 }
 0x143   :  { %v638_v57 = vmax.f32 %v634_v56, 0.0 }
 0x145   :  { %v672_v58 = vpack.c.bf16 %v638_v57, %v638_v57 }
 0x146   :  { %v622_v59 = vpop.f32.mrf.mxu2 }
 0x147   :  { %v635_v60 = vpop.f32.mrf.mxu3  ;;  %792 = vmatmul.bf16.vlgmr.msra.gmra.mxu1 %v672_v58 }
 0x1b4   :  { %v780_v61 = vpop.f32.mrf.mxu0 }
 0x1b5   :  { %v781_v2 = vadd.f32 %v780_v61, %v674_v1 }
 0x1bc   :  { %v782_v0 = vpop.f32.mrf.mxu0 }
 0x1c4   :  { %v793_v3 = vpop.f32.mrf.mxu1 }
 0x1c5   :  { %v794_v4 = vadd.f32 %v793_v3, %v781_v2 }
 0x1c7   :  { %797 = vxpose.xlu0.b32.start.end [1/1] (short) (narrow) %v794_v4, 8 }
 0x1cc   :  { %v795_v5 = vpop.f32.mrf.mxu1 }
 0x26b   :  { %v813_v6 = vpop.trf.xlu0 }
 0x26c   :  { %830 = vst.msk [vmem:[#allocation7] sm:$0xff] %vm829_vm1, %v813_v6 }
 0x26d   :  { %841 = dma.vmem_to_hbm [thread:$0]  %s837_s1, 128, %s839_s23, [#allocation4]  }
 0x26e   :  { %1355 = dma.done.wait [#allocation4], 128  }
 0x26f   :  { %1356 = vsyncadd [#allocation4], 4294967168 }
 0x270   :  { %846 = vsyncpa [#allocation3], 1 }
 0x271   :  { %847 = vsyncpa [#allocation6], 1 }
 0x272   :  { %848 = vsyncpa [#allocation4], 1 }

</bundles_post_ra>
